<compile_context>
chip_gen: v6e
topology: v6e:2x2x1
jax: 0.10.0
libtpu: 0.0.40
codegen_flags: <defaults>
</compile_context>

<pallas_src>
import functools

import jax
import jax.numpy as jnp
from jax.experimental import pallas as pl
from jax.experimental.pallas import tpu as pltpu


def _round_up(x, m):
    return ((x + m - 1) // m) * m


def adapter_kernel(x_ref, w1t_ref, w2t_ref, o_ref, *, compute_dtype):
    # x_ref  : (tm, c_in)           streaming input row tile (HBM dtype)
    # w1t_ref: (c_in, hidden_pad)   fc1 weight, pre-transposed to (in, out) -- VMEM resident
    # w2t_ref: (hidden_pad, c_in)   fc2 weight, pre-transposed to (in, out) -- VMEM resident
    # o_ref  : (tm, c_in)
    x = x_ref[...].astype(compute_dtype)           # in-kernel cast (free vs. extra HBM pass)
    h = jnp.dot(x, w1t_ref[...], preferred_element_type=jnp.float32)
    h = jnp.maximum(h, 0.0)                        # ReLU
    # NOTE: on the bf16 path the hidden activation is re-quantized to bf16 before the
    # second matmul (MXU-friendly); accumulation stays f32.  Slightly looser vs. the
    # PyTorch f32 reference -- covered by the 5e-2 tolerance below.
    y = jnp.dot(h.astype(compute_dtype), w2t_ref[...],
                preferred_element_type=jnp.float32)
    y = jnp.maximum(y, 0.0)                        # ReLU
    o_ref[...] = y.astype(o_ref.dtype)


def _vmem_capacity_bytes():
    """Physical VMEM of the attached chip; conservative 64 MiB (v7x) fallback."""
    try:
        cap = getattr(pltpu.get_tpu_info(), "vmem_capacity_bytes", None)
        if cap:
            return int(cap)
    except Exception:
        pass
    return 64 * 1024 * 1024


def _pick_row_tile(n_rows, c_in, hidden_pad, in_item, out_item, comp_item,
                   budget_bytes, row_align):
    """Largest row tile whose pipeline buffers fit the VMEM budget."""
    chosen = 8
    for tm in (2048, 1024, 512, 384, 256, 128, 64, 32, 16, 8):
        need = (2 * tm * c_in * in_item               # x tile, double-buffered
                + 2 * tm * c_in * out_item            # out tile, double-buffered
                + 2 * c_in * hidden_pad * comp_item   # both weights, single-buffered
                + tm * c_in * comp_item               # in-kernel cast of x tile
                + tm * hidden_pad * 4                 # f32 hidden intermediate
                + tm * c_in * 4)                      # f32 output intermediate
        if need <= budget_bytes:
            chosen = tm
            break
    # Keep >= ~8 grid steps (>= ~4 per TensorCore on 2-TC v7x) and never tile past
    # the (sublane-packing-rounded) batch.
    max_useful = _round_up(max((n_rows + 7) // 8, 1), row_align)
    return max(min(chosen, max_useful), 8)


@functools.partial(jax.jit, static_argnames=("tm", "compute_dtype", "out_dtype"))
def adapter_forward(x, w1, w2, *, tm=None, compute_dtype=None, out_dtype=None):
    """Adapter forward pass.

    x : (N, c_in); w1: (hidden, c_in); w2: (c_in, hidden)  [PyTorch nn.Linear layout]
    compute_dtype: jnp.bfloat16 selects the fast-MXU path (f32 accumulation);
                   None keeps the caller's dtype (exact f32 semantics).
    out_dtype:     output storage dtype (e.g. jnp.bfloat16 to halve output writes);
                   defaults to x.dtype.
    """
    N, c_in = x.shape
    hidden = w1.shape[0]
    assert w1.shape == (hidden, c_in) and w2.shape == (c_in, hidden)

    compute_dtype = x.dtype if compute_dtype is None else jnp.dtype(compute_dtype)
    out_dtype = x.dtype if out_dtype is None else jnp.dtype(out_dtype)

    # --- one-time weight prep (tiny; callers can also store weights pre-transposed) ---
    hidden_pad = _round_up(hidden, 128)            # lane-dense (tm, hidden) intermediate
    w1t = w1.T.astype(compute_dtype)               # (c_in, hidden)
    w2t = w2.T.astype(compute_dtype)               # (hidden, c_in)
    if hidden_pad != hidden:
        w1t = jnp.pad(w1t, ((0, 0), (0, hidden_pad - hidden)))
        w2t = jnp.pad(w2t, ((0, hidden_pad - hidden), (0, 0)))

    in_item = jnp.dtype(x.dtype).itemsize
    out_item = jnp.dtype(out_dtype).itemsize
    comp_item = jnp.dtype(compute_dtype).itemsize
    row_align = max(8, 32 // in_item, 32 // out_item)   # 8 rows f32, 16 bf16, 32 int8

    cap = _vmem_capacity_bytes()
    budget = cap // 2                               # 32 MiB on v7x, 64 MiB on v5e/v6e
    if tm is None:
        tm = _pick_row_tile(N, c_in, hidden_pad, in_item, out_item, comp_item,
                            budget, row_align)
    vmem_limit = min(cap - 8 * 1024 * 1024, budget + 16 * 1024 * 1024)

    # Non-divisible batch: Pallas clips the partial last output block on writeback
    # (garbage rows read in the last input block never land in the output).
    grid = (pl.cdiv(N, tm),)

    return pl.pallas_call(
        functools.partial(adapter_kernel, compute_dtype=compute_dtype),
        out_shape=jax.ShapeDtypeStruct((N, c_in), out_dtype),
        grid_spec=pltpu.PrefetchScalarGridSpec(
            num_scalar_prefetch=0,
            grid=grid,
            in_specs=[
                # Streaming x row tile: default double buffering (DMA/compute overlap).
                pl.BlockSpec((tm, c_in), lambda i: (i, 0)),
                # Grid-invariant weights: single buffer -> half the VMEM footprint.
                pl.BlockSpec((c_in, hidden_pad), lambda i: (0, 0),
                             pipeline_mode=pl.Buffered(buffer_count=1)),
                pl.BlockSpec((hidden_pad, c_in), lambda i: (0, 0),
                             pipeline_mode=pl.Buffered(buffer_count=1)),
            ],
            out_specs=pl.BlockSpec((tm, c_in), lambda i: (i, 0)),
        ),
        compiler_params=pltpu.CompilerParams(
            # Batch axis is independent -> sharded across TensorCores on v7x megacore.
            dimension_semantics=("parallel",),
            vmem_limit_bytes=int(vmem_limit),
        ),
    )(x, w1t, w2t)


def adapter_reference(x, w1, w2):
    h = jnp.maximum(x @ w1.T, 0.0)
    return jnp.maximum(h @ w2.T, 0.0)


if __name__ == "__main__":
    # Small deterministic problem: batch=16, c_in=32, reduction=4 -> hidden=8.
    N, c_in, reduction = 16, 32, 4
    hidden = c_in // reduction

    key = jax.random.PRNGKey(0)
    kx, k1, k2 = jax.random.split(key, 3)

    x = jax.random.normal(kx, (N, c_in), dtype=jnp.float32)
    # Deterministic synthetic weights (PyTorch nn.Linear weight shapes).
    w1 = jax.random.normal(k1, (hidden, c_in), dtype=jnp.float32) * (1.0 / jnp.sqrt(c_in))
    w2 = jax.random.normal(k2, (c_in, hidden), dtype=jnp.float32) * (1.0 / jnp.sqrt(hidden))

    ref = adapter_reference(x, w1, w2)

    # 1) Exact-precision path (f32 operands, f32 MXU accumulation).
    out_f32 = jax.block_until_ready(adapter_forward(x, w1, w2))
    assert out_f32.shape == (N, c_in)
    assert jnp.allclose(out_f32, ref, atol=2e-5, rtol=2e-5), "f32 path mismatch"

    # 2) bf16 fast path (f32 x streamed from HBM, cast in-kernel; f32 accumulation).
    out_bf16 = jax.block_until_ready(
        adapter_forward(x, w1, w2, compute_dtype=jnp.bfloat16))
    assert out_bf16.shape == (N, c_in)
    assert jnp.allclose(out_bf16, ref, atol=5e-2, rtol=5e-2), "bf16 path mismatch"

    # 3) Batch-remainder path: N not a multiple of the row tile (partial last block,
    #    no wrapper pad / slice).
    x_odd = jax.random.normal(jax.random.PRNGKey(1), (N + 3, c_in), dtype=jnp.float32)
    out_odd = jax.block_until_ready(adapter_forward(x_odd, w1, w2))
    assert out_odd.shape == (N + 3, c_in)
    assert jnp.allclose(out_odd, adapter_reference(x_odd, w1, w2),
                        atol=2e-5, rtol=2e-5), "remainder path mismatch"

    # 4) Fully reduced-precision path: bf16 compute + bf16 output storage.
    out_lo = jax.block_until_ready(
        adapter_forward(x, w1, w2, compute_dtype=jnp.bfloat16, out_dtype=jnp.bfloat16))
    assert out_lo.dtype == jnp.bfloat16 and out_lo.shape == (N, c_in)
    assert jnp.allclose(out_lo.astype(jnp.float32), ref, atol=8e-2, rtol=8e-2), \
        "bf16-out path mismatch"

    print("KERNEL_OK")
</pallas_src>

<mosaic_0001>
module attributes {stable_mosaic.version = 11 : i64} {
  func.func @adapter_kernel(%arg0: i32, %arg1: memref<8x32xf32, #tpu.memory_space<vmem>>, %arg2: memref<32x128xf32, #tpu.memory_space<vmem>>, %arg3: memref<128x32xf32, #tpu.memory_space<vmem>>, %arg4: memref<8x32xf32, #tpu.memory_space<vmem>>) attributes {dimension_semantics = [#tpu.dimension_semantics<parallel>], iteration_bounds = array<i64: 2>, scalar_prefetch = 0 : i64, scratch_operands = 0 : i64, tpu.core_type = #tpu.core_type<tc>, window_params = [{transform_indices = @transform_0, window_bounds = array<i64: 8, 32>}, {pipeline_mode = #tpu.pipeline_mode<synchronous>, transform_indices = @transform_1, window_bounds = array<i64: 32, 128>}, {pipeline_mode = #tpu.pipeline_mode<synchronous>, transform_indices = @transform_2, window_bounds = array<i64: 128, 32>}, {transform_indices = @transform_3, window_bounds = array<i64: 8, 32>}]} {
    %c0 = arith.constant 0 : index
    %c0_0 = arith.constant 0 : index
    %0 = vector.load %arg1[%c0, %c0_0] : memref<8x32xf32, #tpu.memory_space<vmem>>, vector<8x32xf32>
    %c0_1 = arith.constant 0 : index
    %c0_2 = arith.constant 0 : index
    %1 = vector.load %arg2[%c0_1, %c0_2] : memref<32x128xf32, #tpu.memory_space<vmem>>, vector<32x128xf32>
    %cst = arith.constant dense<0.000000e+00> : vector<8x128xf32>
    %2 = tpu.matmul %0, %1, %cst {dimension_numbers = #tpu.dot_dimension_numbers<[1], [0], [0], [1], [0, 0, 1, 1], [], []>} : vector<8x32xf32>, vector<32x128xf32>, vector<8x128xf32> -> vector<8x128xf32>
    %cst_3 = arith.constant 0.000000e+00 : f32
    %3 = vector.broadcast %cst_3 : f32 to vector<8x128xf32>
    %4 = arith.maximumf %2, %3 : vector<8x128xf32>
    %c0_4 = arith.constant 0 : index
    %c0_5 = arith.constant 0 : index
    %5 = vector.load %arg3[%c0_4, %c0_5] : memref<128x32xf32, #tpu.memory_space<vmem>>, vector<128x32xf32>
    %cst_6 = arith.constant dense<0.000000e+00> : vector<8x32xf32>
    %6 = tpu.matmul %4, %5, %cst_6 {dimension_numbers = #tpu.dot_dimension_numbers<[1], [0], [0], [1], [0, 0, 1, 1], [], []>} : vector<8x128xf32>, vector<128x32xf32>, vector<8x32xf32> -> vector<8x32xf32>
    %cst_7 = arith.constant 0.000000e+00 : f32
    %7 = vector.broadcast %cst_7 : f32 to vector<8x32xf32>
    %8 = arith.maximumf %6, %7 : vector<8x32xf32>
    %c0_8 = arith.constant 0 : index
    %c0_9 = arith.constant 0 : index
    %9 = vector.load %arg4[%c0_8, %c0_9] : memref<8x32xf32, #tpu.memory_space<vmem>>, vector<8x32xf32>
    tpu.vector_store %arg4[%c0_8, %c0_9], %8 {strides = array<i32>} : memref<8x32xf32, #tpu.memory_space<vmem>>, vector<8x32xf32>,
    return
  }
  func.func @transform_0(%arg0: i32) -> (i32, i32) {
    %c0_i32 = arith.constant 0 : i32
    %c0_i32_0 = arith.constant 0 : i32
    return %arg0, %c0_i32 : i32, i32
  }
  func.func @transform_1(%arg0: i32) -> (i32, i32) {
    %c0_i32 = arith.constant 0 : i32
    %c0_i32_0 = arith.constant 0 : i32
    %c0_i32_1 = arith.constant 0 : i32
    return %c0_i32, %c0_i32_0 : i32, i32
  }
  func.func @transform_2(%arg0: i32) -> (i32, i32) {
    %c0_i32 = arith.constant 0 : i32
    %c0_i32_0 = arith.constant 0 : i32
    %c0_i32_1 = arith.constant 0 : i32
    return %c0_i32, %c0_i32_0 : i32, i32
  }
  func.func @transform_3(%arg0: i32) -> (i32, i32) {
    %c0_i32 = arith.constant 0 : i32
    %c0_i32_0 = arith.constant 0 : i32
    return %arg0, %c0_i32 : i32, i32
  }
}

</mosaic_0001>

<bundles_post_ra>
// kernel: adapter_forward.1
= control target key start
LH: loop header
LB: loop body
LE: loop exit
PB: predicated region body
PF: predicated region fallthrough
CT: control target
= control target key end

     0   :  { %8 = vsyncpa [#allocation3], 0  ;;  %s791_s0 = inlined_call_operand.vmem [shape: f32[16,32], index: 0, kind: input, shape index: {}]   ;;  %s792_s1 = inlined_call_operand.vmem [shape: f32[32,128], index: 1, kind: input, shape index: {}]   ;;  %s793_s2 = inlined_call_operand.vmem [shape: f32[128,32], index: 2, kind: input, shape index: {}]   ;;  %s794_s3 = inlined_call_operand.hbm [shape: f32[16,32], index: 3, kind: output, shape index: {}]  }
   0x1   :  { %10 = vsyncpa [#allocation3 + $0x1], 0  ;;  %s612_s12 = smov 0   ;;  %s614_s13 = smov 0  }
   0x2   :  { %s616_s14 = smov 0   ;;  %s618_s15 = smov 0  }
   0x3 LB: > { %s633_s16 = sadd.s32 4294967295, %s587_s15   ;;  %s407_s17 = sadd.s32 4294967294, %s587_s15   ;;  %s587_s15 = sphi %s618_s15, %s800_s15   ;;  %s583_s14 = sphi %s616_s14, %s799_s14   ;;  %s579_s13 = sphi %s614_s13, %s798_s13   ;;  %s575_s12 = sphi %s612_s12, %s797_s12  }
   0x4   : > { %s637_s18 = sadd.s32 1, %s587_s15   ;;  %s91_s19 = sadd.s32 1, %s583_s14 }
   0x5   : > { %s88_s20 = ssub.s32 %s587_s15, %s637_s18  ;;  %p101_p0 = scmp.ne.s32.totalorder %s583_s14, %s579_s13 }
   0x6   : > { %p89_p1 = scmp.eq.s32.totalorder %s88_s20, 0  ;;  %p102_p2 = scmp.eq.s32.totalorder %s633_s16, 1 }
   0x7   : > { %p107_p3 = scmp.ne.s32.totalorder %s579_s13, %s575_s12  ;;  %p108_p4 = scmp.eq.s32.totalorder %s407_s17, 1 }
   0x8   : > { %s648_s21 = scalar_select %p89_p1, %s583_s14, %s91_s19  }
   0x9   : > { %p650_p5 = por %p102_p2, %p101_p0  ;;  %p654_p6 = por %p108_p4, %p107_p3 }
   0xa   : > { %p410_p7 = scmp.ge.s32.totalorder %s587_s15, 1  ;;  %p139_p8 = scmp.lt.s32.totalorder %s587_s15, 3 }
   0xc   : > { %p140_p9 = pnand %p410_p7, %p139_p8 }
   0xd   : > { %p162_p10 = scmp.lt.s32.totalorder (!%p140_p9), %s633_s16, 1  ;;  %s159_s6 = sand.u32 (!%p140_p9), 1, %s579_s13  }
   0xe   : > { %143 = sbr.rel (%p140_p9) target bundleno = 431 (0x1af), region = 32  ;;  %s411_s7 = sshll.u32 (!%p140_p9), %s159_s6, 3 }
   0xf   : > { %s161_s9 = scalar_lea.vmem (!%p140_p9), [#allocation2], %s411_s7  ;;  %s335_s20 = scalar_lea.sflag (!%p140_p9), [#allocation3], %s159_s6 }
  0x10   : > { %s348_s10 = sshll.u32 (!%p140_p9), %s161_s9, 4  ;;  %s349_s10 = int_to_ptr.vmem [resolvable:$true] %s348_s10 }
  0x13   : > { %v170_v0 = vld [vmem:[%s792_s1 + $0x18] sm:$0xff]  ;;  %v589_v1 = vmov 0.0   ;;  %v169_v2 = vld [vmem:[%s792_s1 + $0x10] sm:$0xff]  ;;  %vm590_vm0 = vmmov 0   ;;  %s163_s30 = scalar_select %p162_p10, %s633_s16, 1  ;;  %v168_v5 = vld [vmem:[%s792_s1 + $0x8] sm:$0xff] }
  0x14   : > { %440 = vmatprep.subr.mxu0 %v589_v1  ;;  %448 = vmatprep.mubr.msk.f32.mxu0 %vm590_vm0, %v589_v1  ;;  %v261_v3 = vld [vmem:[%s793_s2 + $0x78] sm:$0xff]  ;;  %v260_v4 = vld [vmem:[%s793_s2 + $0x70] sm:$0xff]  ;;  %v259_v6 = vld [vmem:[%s793_s2 + $0x68] sm:$0xff]  ;;  %vm171_vm1 = vcmask 261120  }
  0x15   : > { %441 = vmatpush3.msra.mxu0 %v170_v0  ;;  %451 = vmatprep.subr.mxu1 %v589_v1  ;;  %s412_s8 = sshll.u32 %s163_s30, 3  ;;  %v167_v7 = vld [vmem:[%s792_s1] sm:$0xff]  ;;  %v257_v10 = vld [vmem:[%s793_s2 + $0x58] sm:$0xff]  ;;  %v256_v11 = vld [vmem:[%s793_s2 + $0x50] sm:$0xff] }
  0x16   : > { %442 = vmatprep.subr.mxu0 %v589_v1  ;;  %452 = vmatpush3.msra.mxu1 %v261_v3  ;;  %s165_s24 = scalar_lea.vmem %s791_s0, %s412_s8  ;;  %v258_v9 = vld [vmem:[%s793_s2 + $0x60] sm:$0xff]  ;;  %v255_v12 = vld [vmem:[%s793_s2 + $0x48] sm:$0xff]  ;;  %v253_v14 = vld [vmem:[%s793_s2 + $0x38] sm:$0xff]  ;;  %s415_s8 = sshll.u32 %s633_s16, 7 }
  0x17   : > { %443 = vmatpush3.msra.mxu0 %v169_v2  ;;  %453 = vmatprep.subr.mxu1 %v589_v1  ;;  %v166_v8 = vld [vmem:[%s165_s24] sm:$0xff]  ;;  %v252_v15 = vld [vmem:[%s793_s2 + $0x30] sm:$0xff]  ;;  %v251_v16 = vld [vmem:[%s793_s2 + $0x28] sm:$0xff]  ;;  %s755_s19 = scalar_lea.hbm %s794_s3, %s415_s8  ;;  %s527_s24 = scalar_lea.vmem %s349_s10, 128 }
  0x18   : > { %444 = vmatprep.subr.mxu0 %v589_v1  ;;  %454 = vmatpush3.msra.mxu1 %v260_v4  ;;  %v254_v13 = vld [vmem:[%s793_s2 + $0x40] sm:$0xff]  ;;  %v249_v18 = vld [vmem:[%s793_s2 + $0x18] sm:$0xff]  ;;  %v248_v19 = vld [vmem:[%s793_s2 + $0x10] sm:$0xff]  ;;  %p528_p11 = scmp.ne.s32.totalorder %s349_s10, %s527_s24  ;;  %s591_s16 = smov [#allocation2]  }
  0x19   : > { %445 = vmatpush3.msra.mxu0 %v168_v5  ;;  %455 = vmatprep.subr.mxu1 %v589_v1  ;;  %v250_v17 = vld [vmem:[%s793_s2 + $0x20] sm:$0xff]  ;;  %v247_v20 = vld [vmem:[%s793_s2 + $0x8] sm:$0xff]  ;;  %s531_s25 = sshll.u32 %s591_s16, 4  ;;  %s532_s25 = int_to_ptr.vmem [resolvable:$false] %s531_s25 }
  0x1a   : > { %446 = vmatprep.subr.mxu0 %v589_v1  ;;  %456 = vmatpush3.msra.mxu1 %v259_v6  ;;  %v246_v21 = vld [vmem:[%s793_s2] sm:$0xff]  ;;  %p529_p12 = pnand %p528_p11, %p650_p5  ;;  %s533_s26 = scalar_lea.vmem %s532_s25, 256 }
  0x1b   : > { %447 = vmatpush3.msra.mxu0 %v167_v7  ;;  %457 = vmatprep.subr.mxu1 %v589_v1  ;;  %p534_p0 = scmp.lt.s32.totalorder %s349_s10, %s532_s25  ;;  %p535_p1 = scmp.lt.s32.totalorder %s533_s26, %s527_s24 }
  0x1c   : > { %449 = vmatmul.mubr.msk.f32.vlgmr.msra.gmra.mxu0 %vm171_vm1, %v166_v8  ;;  %458 = vmatpush3.msra.mxu1 %v258_v9  ;;  %p530_p13 = pneg %p529_p12 }
  0x1d   : > { %459 = vmatprep.subr.mxu1 %v589_v1  ;;  %483 = vmatprep.mubr.msk.f32.mxu1 %vm590_vm0, %v589_v1  ;;  %p536_p2 = por %p535_p1, %p534_p0 }
  0x1e   : > { %460 = vmatpush3.msra.mxu1 %v257_v10 }
  0x1f   : > { %461 = vmatprep.subr.mxu1 %v589_v1  ;;  %p537_p3 = pnand %p536_p2, %p530_p13 }
  0x20   : > { %462 = vmatpush3.msra.mxu1 %v256_v11 }
  0x21   : > { %463 = vmatprep.subr.mxu1 %v589_v1 }
  0x22   : > { %464 = vmatpush3.msra.mxu1 %v255_v12 }
  0x23   : > { %465 = vmatprep.subr.mxu1 %v589_v1 }
  0x24   : > { %466 = vmatpush3.msra.mxu1 %v254_v13 }
  0x25   : > { %467 = vmatprep.subr.mxu1 %v589_v1 }
  0x26   : > { %468 = vmatpush3.msra.mxu1 %v253_v14 }
  0x27   : > { %469 = vmatprep.subr.mxu1 %v589_v1 }
  0x28   : > { %470 = vmatpush3.msra.mxu1 %v252_v15 }
  0x29   : > { %471 = vmatprep.subr.mxu1 %v589_v1 }
  0x2a   : > { %472 = vmatpush3.msra.mxu1 %v251_v16 }
  0x2b   : > { %473 = vmatprep.subr.mxu1 %v589_v1 }
  0x2c   : > { %474 = vmatpush3.msra.mxu1 %v250_v17 }
  0x2d   : > { %475 = vmatprep.subr.mxu1 %v589_v1 }
  0x2e   : > { %476 = vmatpush3.msra.mxu1 %v249_v18 }
  0x2f   : > { %477 = vmatprep.subr.mxu1 %v589_v1 }
  0x30   : > { %478 = vmatpush3.msra.mxu1 %v248_v19 }
  0x31   : > { %479 = vmatprep.subr.mxu1 %v589_v1 }
  0x32   : > { %480 = vmatpush3.msra.mxu1 %v247_v20 }
  0x33   : > { %481 = vmatprep.subr.mxu1 %v589_v1 }
  0x34   : > { %482 = vmatpush3.msra.mxu1 %v246_v21 }
  0xdc   : > { %v241_v22 = vpop.f32.mrf.mxu0 }
  0xdd   : > { %v245_v23 = vmax.f32 %v241_v22, 0.0 }
  0xde   : > { %v450_v24 = vpop.f32.mrf.mxu0 }
  0xdf   : > { %484 = vmatmul.mubr.f32.vlgmr.msra.gmra.mxu1 %v245_v23 }
 0x19f   : > { %v328_v25 = vpop.f32.mrf.mxu1 }
 0x1a0   : > { %v332_v26 = vmax.f32 %v328_v25, 0.0 }
 0x1a1   : > { %v485_v27 = vpop.f32.mrf.mxu1 }
 0x1a2   : > { %333 = vst.msk [vmem:[%s161_s9] sm:$0xff] %vm171_vm1, %v332_v26 }
 0x1a3   : > { %540 = shalt.err (!%p537_p3)
}
 0x1a4   : > { %s541_s27 = scalar_lea.hbm %s755_s19, 128  ;;  %s545_s30 = scalar_lea.hbm %s794_s3, 256 }
 0x1a5   : > { %p542_p4 = scmp.ne.s32.totalorder %s755_s19, %s541_s27  ;;  %p546_p9 = scmp.lt.s32.totalorder %s755_s19, %s794_s3 }
 0x1a6   : > { %p547_p10 = scmp.lt.s32.totalorder %s545_s30, %s541_s27 }
 0x1a7   : > { %p543_p7 = pnand %p542_p4, %p650_p5 }
 0x1a8   : > { %p548_p11 = por %p547_p10, %p546_p9 }
 0x1a9   : > { %p544_p8 = pneg %p543_p7 }
 0x1ab   : > { %p549_p12 = pnand %p548_p11, %p544_p8 }
 0x1ad   : > { %552 = shalt.err (!%p549_p12)
}
 0x1ae   : > { %486 = dma.vmem_to_hbm [thread:$0]  (%p650_p5), %s349_s10, 128, %s755_s19, %s335_s20  }
 0x1af PF: > { %p492_p13 = scmp.ge.s32.totalorder %s587_s15, 2  ;;  %s360_s6 = sand.u32 1, %s575_s12  }
 0x1b0   : > { %s361_s7 = scalar_lea.sflag [#allocation3], %s360_s6 }
 0x1b1   : > { %p489_p0 = pnand %p492_p13, %p654_p6 }
 0x1b3   : > { %p490_p1 = pneg %p489_p0 }
 0x1b5   : > { %570 = dma.done.wait (%p490_p1), %s361_s7, 128  }
 0x1b6   : > { %572 = vsyncadd (%p490_p1), %s361_s7, 4294967168  ;;  %p13_p2 = scmp.ge.s32.totalorder %s637_s18, 4   ;;  %s797_s12 = smov %s579_s13 }
 0x1b7   : > { %s798_s13 = smov %s583_s14  ;;  %s799_s14 = smov %s648_s21 }
 0x1b8   : > { %s800_s15 = smov %s637_s18  ;;  %15 = sbr.rel (!%p13_p2) target bundleno = 3 (0x3), region = 67 }
 0x1bd   :  { %366 = vsyncpa [#allocation3], 1 }
 0x1be   :  { %368 = vsyncpa [#allocation3 + $0x1], 1 }

</bundles_post_ra>
